<compile_context>
chip_gen: v6e
topology: v6e:2x2x1
jax: 0.10.0
libtpu: 0.0.40
codegen_flags: <defaults>
</compile_context>

<pallas_src>
import functools

import jax
import jax.numpy as jnp
from jax.experimental import pallas as pl
from jax.experimental.pallas import tpu as pltpu


def _round_up(x, m):
    return ((x + m - 1) // m) * m


def node_head_kernel(x_ref, w1_ref, b1_ref, w2_ref, b2_ref, o_ref):
    # dropout (eval mode) -> identity
    # dense: (tm, D_in) @ (D_in, D_inner), accumulate in f32 on the MXU
    h = jnp.dot(x_ref[...], w1_ref[...], preferred_element_type=jnp.float32)
    # bias + activation in f32 (tanh goes to the EUP slot); b1 is (1, D_inner), broadcasts
    h = jnp.tanh(h + b1_ref[...])
    # dropout (eval mode) -> identity
    # out_proj: cast back to the (bf16) compute dtype for MXU throughput, accumulate in f32
    h = h.astype(w2_ref.dtype)
    out = jnp.dot(h, w2_ref[...], preferred_element_type=jnp.float32)
    out = out + b2_ref[...]                      # (1, C_pad) broadcasts over rows
    o_ref[...] = out.astype(o_ref.dtype)


def _choose_tm(N, D_in, D_inner, C_pad, compute_dtype):
    """Largest 128-aligned row tile (<=512) whose VMEM footprint fits the default scoped limit
    on all of v5e / v6e / v7x (~24 MiB budget keeps headroom under the 32 MiB scoped default
    and under v7x's 64 MiB physical VMEM)."""
    bpe = jnp.dtype(compute_dtype).itemsize
    budget = 24 * 1024 * 1024
    # Resident weights/biases (the pipeline double-buffers them even though grid-invariant).
    resident = 2 * (D_in * D_inner + D_inner * C_pad) * bpe + 2 * (D_inner + C_pad) * 4
    avail = max(budget - resident, 1 << 20)
    # Per-row VMEM: double-buffered x block, double-buffered out block (f32 worst case),
    # plus the staged (tm, D_inner) f32 intermediate.
    per_row = 2 * D_in * bpe + 2 * C_pad * 4 + D_inner * 4
    tm = avail // per_row
    # Cap at 512 (bounds vreg pressure from the f32 intermediate); align to 128 (MXU geometry
    # and bf16 sublane packing).
    tm = max(128, min(512, (tm // 128) * 128))
    # Don't pad a small problem far past N.
    tm = min(tm, _round_up(max(int(N), 1), 128))
    return int(tm)


@functools.partial(jax.jit, static_argnames=("tm", "compute_dtype"))
def node_classification_head(features, w1, b1, w2, b2, *, tm=None,
                             compute_dtype=jnp.bfloat16):
    """features: (B, T, input_dim).  Returns (B, T, num_classes) in features.dtype.

    Weights are stored pre-transposed as (in, out) so the kernel computes x @ W.
    """
    B, T, D_in = features.shape
    D_inner = w1.shape[1]
    C = w2.shape[1]
    N = B * T
    out_dtype = features.dtype

    # ---- lane-dense output: pad num_classes to a multiple of 128 --------------------------
    C_pad = _round_up(C, 128)
    w2p = jnp.pad(w2, ((0, 0), (0, C_pad - C)))
    b2p = jnp.pad(b2, ((0, C_pad - C),))

    # ---- cast matmul operands to the compute dtype (bf16 by default); biases stay f32 -----
    x2d = features.reshape(N, D_in).astype(compute_dtype)
    w1c = w1.astype(compute_dtype)
    w2c = w2p.astype(compute_dtype)
    b1_2d = b1.reshape(1, D_inner).astype(jnp.float32)
    b2_2d = b2p.reshape(1, C_pad).astype(jnp.float32)

    # ---- pick a big MXU-aligned row tile and pad N up to a multiple of it ------------------
    if tm is None:
        tm = _choose_tm(N, D_in, D_inner, C_pad, compute_dtype)
    N_pad = _round_up(N, tm)
    if N_pad != N:
        x2d = jnp.pad(x2d, ((0, N_pad - N), (0, 0)))

    grid = (N_pad // tm,)
    out2d = pl.pallas_call(
        node_head_kernel,
        out_shape=jax.ShapeDtypeStruct((N_pad, C_pad), out_dtype),
        grid_spec=pltpu.PrefetchScalarGridSpec(
            num_scalar_prefetch=0,
            grid=grid,
            in_specs=[
                pl.BlockSpec((tm, D_in), lambda i: (i, 0)),        # x row-tile (streamed)
                pl.BlockSpec((D_in, D_inner), lambda i: (0, 0)),   # dense weight (resident)
                pl.BlockSpec((1, D_inner), lambda i: (0, 0)),      # dense bias (f32)
                pl.BlockSpec((D_inner, C_pad), lambda i: (0, 0)),  # out_proj weight (resident)
                pl.BlockSpec((1, C_pad), lambda i: (0, 0)),        # out_proj bias (f32)
            ],
            out_specs=pl.BlockSpec((tm, C_pad), lambda i: (i, 0)),
        ),
        compiler_params=pltpu.CompilerParams(
            dimension_semantics=("parallel",),
        ),
    )(x2d, w1c, b1_2d, w2c, b2_2d)

    return out2d[:N, :C].reshape(B, T, C)


def init_params(key, input_dim, inner_dim, num_classes, dtype=jnp.float32):
    """Deterministic synthetic init matching nn.Linear parameter shapes.
    Weights are stored pre-transposed as (in, out) so the kernel does x @ W."""
    k1, k2, k3, k4 = jax.random.split(key, 4)
    w1 = (jax.random.normal(k1, (input_dim, inner_dim), dtype) * 0.02).astype(dtype)
    b1 = (jax.random.normal(k2, (inner_dim,), dtype) * 0.02).astype(dtype)
    w2 = (jax.random.normal(k3, (inner_dim, num_classes), dtype) * 0.02).astype(dtype)
    b2 = (jax.random.normal(k4, (num_classes,), dtype) * 0.02).astype(dtype)
    return w1, b1, w2, b2


if __name__ == "__main__":
    # Small shapes: batch=2, seq=8, input_dim=32, inner_dim=32, num_classes=8
    B, T, D_in, D_inner, C = 2, 8, 32, 32, 8
    key = jax.random.PRNGKey(0)
    kx, kp = jax.random.split(key)

    features = jax.random.normal(kx, (B, T, D_in), jnp.float32)
    w1, b1, w2, b2 = init_params(kp, D_in, D_inner, C)

    # Pure-JAX reference (dropout = identity in eval mode), f32 end to end.
    ref = jnp.tanh(features @ w1 + b1) @ w2 + b2

    # 1) f32-compute path, tight tolerance (exact semantics of the PyTorch module).
    out_f32 = node_classification_head(features, w1, b1, w2, b2,
                                       compute_dtype=jnp.float32)
    out_f32 = jax.block_until_ready(out_f32)
    assert out_f32.shape == (B, T, C)
    assert jnp.allclose(out_f32, ref, atol=1e-5, rtol=1e-5)

    # 2) Optimized bf16-compute path (f32 accumulation), loose tolerance vs the f32 reference.
    out_bf16 = node_classification_head(features, w1, b1, w2, b2,
                                        compute_dtype=jnp.bfloat16)
    out_bf16 = jax.block_until_ready(out_bf16)
    assert out_bf16.shape == (B, T, C)
    assert jnp.allclose(out_bf16, ref, atol=2e-2, rtol=2e-2)

    print("KERNEL_OK")
</pallas_src>

<mosaic_0001>
module attributes {stable_mosaic.version = 11 : i64} {
  func.func @node_head_kernel(%arg0: i32, %arg1: memref<128x32xf32, #tpu.memory_space<vmem>>, %arg2: memref<32x32xf32, #tpu.memory_space<vmem>>, %arg3: memref<1x32xf32, #tpu.memory_space<vmem>>, %arg4: memref<32x128xf32, #tpu.memory_space<vmem>>, %arg5: memref<1x128xf32, #tpu.memory_space<vmem>>, %arg6: memref<128x128xf32, #tpu.memory_space<vmem>>) attributes {dimension_semantics = [#tpu.dimension_semantics<parallel>], iteration_bounds = array<i64: 1>, scalar_prefetch = 0 : i64, scratch_operands = 0 : i64, tpu.core_type = #tpu.core_type<tc>, window_params = [{transform_indices = @transform_0, window_bounds = array<i64: 128, 32>}, {pipeline_mode = #tpu.pipeline_mode<synchronous>, transform_indices = @transform_1, window_bounds = array<i64: 32, 32>}, {pipeline_mode = #tpu.pipeline_mode<synchronous>, transform_indices = @transform_2, window_bounds = array<i64: 1, 32>}, {pipeline_mode = #tpu.pipeline_mode<synchronous>, transform_indices = @transform_3, window_bounds = array<i64: 32, 128>}, {pipeline_mode = #tpu.pipeline_mode<synchronous>, transform_indices = @transform_4, window_bounds = array<i64: 1, 128>}, {transform_indices = @transform_5, window_bounds = array<i64: 128, 128>}]} {
    %c0 = arith.constant 0 : index
    %c0_0 = arith.constant 0 : index
    %0 = vector.load %arg1[%c0, %c0_0] : memref<128x32xf32, #tpu.memory_space<vmem>>, vector<128x32xf32>
    %c0_1 = arith.constant 0 : index
    %c0_2 = arith.constant 0 : index
    %1 = vector.load %arg2[%c0_1, %c0_2] : memref<32x32xf32, #tpu.memory_space<vmem>>, vector<32x32xf32>
    %cst = arith.constant dense<0.000000e+00> : vector<128x32xf32>
    %2 = tpu.matmul %0, %1, %cst {dimension_numbers = #tpu.dot_dimension_numbers<[1], [0], [0], [1], [0, 0, 1, 1], [], []>} : vector<128x32xf32>, vector<32x32xf32>, vector<128x32xf32> -> vector<128x32xf32>
    %c0_3 = arith.constant 0 : index
    %c0_4 = arith.constant 0 : index
    %3 = vector.load %arg3[%c0_3, %c0_4] : memref<1x32xf32, #tpu.memory_space<vmem>>, vector<1x32xf32>
    %4 = vector.broadcast %3 : vector<1x32xf32> to vector<128x32xf32>
    %5 = arith.addf %2, %4 : vector<128x32xf32>
    %6 = math.tanh %5 : vector<128x32xf32>
    %c0_5 = arith.constant 0 : index
    %c0_6 = arith.constant 0 : index
    %7 = vector.load %arg4[%c0_5, %c0_6] : memref<32x128xf32, #tpu.memory_space<vmem>>, vector<32x128xf32>
    %cst_7 = arith.constant dense<0.000000e+00> : vector<128x128xf32>
    %8 = tpu.matmul %6, %7, %cst_7 {dimension_numbers = #tpu.dot_dimension_numbers<[1], [0], [0], [1], [0, 0, 1, 1], [], []>} : vector<128x32xf32>, vector<32x128xf32>, vector<128x128xf32> -> vector<128x128xf32>
    %c0_8 = arith.constant 0 : index
    %c0_9 = arith.constant 0 : index
    %9 = vector.load %arg5[%c0_8, %c0_9] : memref<1x128xf32, #tpu.memory_space<vmem>>, vector<1x128xf32>
    %10 = vector.broadcast %9 : vector<1x128xf32> to vector<128x128xf32>
    %11 = arith.addf %8, %10 : vector<128x128xf32>
    %c0_10 = arith.constant 0 : index
    %c0_11 = arith.constant 0 : index
    %12 = vector.load %arg6[%c0_10, %c0_11] : memref<128x128xf32, #tpu.memory_space<vmem>>, vector<128x128xf32>
    tpu.vector_store %arg6[%c0_10, %c0_11], %11 {strides = array<i32>} : memref<128x128xf32, #tpu.memory_space<vmem>>, vector<128x128xf32>,
    return
  }
  func.func @transform_0(%arg0: i32) -> (i32, i32) {
    %c0_i32 = arith.constant 0 : i32
    %c0_i32_0 = arith.constant 0 : i32
    return %arg0, %c0_i32 : i32, i32
  }
  func.func @transform_1(%arg0: i32) -> (i32, i32) {
    %c0_i32 = arith.constant 0 : i32
    %c0_i32_0 = arith.constant 0 : i32
    %c0_i32_1 = arith.constant 0 : i32
    return %c0_i32, %c0_i32_0 : i32, i32
  }
  func.func @transform_2(%arg0: i32) -> (i32, i32) {
    %c0_i32 = arith.constant 0 : i32
    %c0_i32_0 = arith.constant 0 : i32
    %c0_i32_1 = arith.constant 0 : i32
    return %c0_i32, %c0_i32_0 : i32, i32
  }
  func.func @transform_3(%arg0: i32) -> (i32, i32) {
    %c0_i32 = arith.constant 0 : i32
    %c0_i32_0 = arith.constant 0 : i32
    %c0_i32_1 = arith.constant 0 : i32
    return %c0_i32, %c0_i32_0 : i32, i32
  }
  func.func @transform_4(%arg0: i32) -> (i32, i32) {
    %c0_i32 = arith.constant 0 : i32
    %c0_i32_0 = arith.constant 0 : i32
    %c0_i32_1 = arith.constant 0 : i32
    return %c0_i32, %c0_i32_0 : i32, i32
  }
  func.func @transform_5(%arg0: i32) -> (i32, i32) {
    %c0_i32 = arith.constant 0 : i32
    %c0_i32_0 = arith.constant 0 : i32
    return %arg0, %c0_i32 : i32, i32
  }
}

</mosaic_0001>

<bundles_post_ra>
// kernel: node_classification_head.1
= control target key start
LH: loop header
LB: loop body
LE: loop exit
PB: predicated region body
PF: predicated region fallthrough
CT: control target
= control target key end

     0   :  { %vm47_vm0 = vcmask 261120   ;;  %s839_s1 = inlined_call_operand.vmem [shape: f32[32,32], index: 1, kind: input, shape index: {}]   ;;  %s840_s0 = inlined_call_operand.vmem [shape: f32[128,32], index: 0, kind: input, shape index: {}]   ;;  %s841_s3 = inlined_call_operand.vmem [shape: f32[32,128], index: 3, kind: input, shape index: {}]   ;;  %s842_s2 = inlined_call_operand.vmem [shape: f32[1,32], index: 2, kind: input, shape index: {}]   ;;  %s843_s4 = inlined_call_operand.vmem [shape: f32[1,128], index: 4, kind: input, shape index: {}]   ;;  %s844_s5 = inlined_call_operand.vmem [shape: f32[128,128], index: 5, kind: output, shape index: {}]  }
   0x1   :  { %v39_v0 = vld [vmem:[%s839_s1 + $0x18] sm:$0xff]  ;;  %v38_v1 = vld [vmem:[%s839_s1 + $0x10] sm:$0xff]  ;;  %v20_v2 = vld [vmem:[%s840_s0] sm:$0xff] }
   0x2   :  { %555 = vmatprep.subr.mxu0 %v39_v0  ;;  %v37_v3 = vld [vmem:[%s839_s1 + $0x8] sm:$0xff]  ;;  %563 = vmatprep.mubr.msk.f32.mxu0 %vm47_vm0, %v20_v2  ;;  %v36_v4 = vld [vmem:[%s839_s1] sm:$0xff]  ;;  %v22_v6 = vld [vmem:[%s840_s0 + $0x10] sm:$0xff] }
   0x3   :  { %556 = vmatpush3.msra.mxu0 %v39_v0  ;;  %v21_v5 = vld [vmem:[%s840_s0 + $0x8] sm:$0xff]  ;;  %v23_v7 = vld [vmem:[%s840_s0 + $0x18] sm:$0xff]  ;;  %v24_v8 = vld [vmem:[%s840_s0 + $0x20] sm:$0xff] }
   0x4   :  { %557 = vmatprep.subr.mxu0 %v38_v1  ;;  %v25_v9 = vld [vmem:[%s840_s0 + $0x28] sm:$0xff]  ;;  %v26_v10 = vld [vmem:[%s840_s0 + $0x30] sm:$0xff]  ;;  %v27_v11 = vld [vmem:[%s840_s0 + $0x38] sm:$0xff] }
   0x5   :  { %558 = vmatpush3.msra.mxu0 %v38_v1  ;;  %v28_v12 = vld [vmem:[%s840_s0 + $0x40] sm:$0xff]  ;;  %v29_v13 = vld [vmem:[%s840_s0 + $0x48] sm:$0xff]  ;;  %v30_v14 = vld [vmem:[%s840_s0 + $0x50] sm:$0xff] }
   0x6   :  { %559 = vmatprep.subr.mxu0 %v37_v3  ;;  %v31_v15 = vld [vmem:[%s840_s0 + $0x58] sm:$0xff]  ;;  %v32_v16 = vld [vmem:[%s840_s0 + $0x60] sm:$0xff]  ;;  %v33_v17 = vld [vmem:[%s840_s0 + $0x68] sm:$0xff] }
   0x7   :  { %560 = vmatpush3.msra.mxu0 %v37_v3  ;;  %v34_v18 = vld [vmem:[%s840_s0 + $0x70] sm:$0xff]  ;;  %v35_v19 = vld [vmem:[%s840_s0 + $0x78] sm:$0xff]  ;;  %v258_v22 = vld [vmem:[%s841_s3 + $0x8] sm:$0xff] }
   0x8   :  { %561 = vmatprep.subr.mxu0 %v36_v4  ;;  %v260_v20 = vld [vmem:[%s841_s3 + $0x18] sm:$0xff]  ;;  %v259_v21 = vld [vmem:[%s841_s3 + $0x10] sm:$0xff]  ;;  %v257_v23 = vld [vmem:[%s841_s3] sm:$0xff] }
   0x9   :  { %562 = vmatpush3.msra.mxu0 %v36_v4  ;;  %587 = vmatprep.subr.mxu1 %v260_v20  ;;  %v481_v24 = vld [vmem:[%s842_s2] ss:$0 sm:$0xff] }
   0xa   :  { %564 = vmatmul.mubr.msk.f32.vlgmr.msra.gmra.mxu0 %vm47_vm0, %v21_v5  ;;  %588 = vmatpush3.msra.mxu1 %v260_v20 }
   0xb   :  { %566 = vmatprep.mubr.msk.f32.mxu0 %vm47_vm0, %v22_v6  ;;  %589 = vmatprep.subr.mxu1 %v259_v21 }
   0xc   :  { %590 = vmatpush3.msra.mxu1 %v259_v21 }
   0xd   :  { %591 = vmatprep.subr.mxu1 %v258_v22 }
   0xe   :  { %567 = vmatmul.mubr.msk.f32.gmra.mxu0 %vm47_vm0, %v23_v7  ;;  %592 = vmatpush3.msra.mxu1 %v258_v22 }
   0xf   :  { %569 = vmatprep.mubr.msk.f32.mxu0 %vm47_vm0, %v24_v8  ;;  %593 = vmatprep.subr.mxu1 %v257_v23 }
  0x10   :  { %594 = vmatpush3.msra.mxu1 %v257_v23 }
  0x12   :  { %570 = vmatmul.mubr.msk.f32.gmra.mxu0 %vm47_vm0, %v25_v9  ;;  %v498_v9 = vld [vmem:[%s843_s4] ss:$0 sm:$0xff] }
  0x13   :  { %572 = vmatprep.mubr.msk.f32.mxu0 %vm47_vm0, %v26_v10 }
  0x16   :  { %573 = vmatmul.mubr.msk.f32.gmra.mxu0 %vm47_vm0, %v27_v11 }
  0x17   :  { %575 = vmatprep.mubr.msk.f32.mxu0 %vm47_vm0, %v28_v12 }
  0x1a   :  { %576 = vmatmul.mubr.msk.f32.gmra.mxu0 %vm47_vm0, %v29_v13 }
  0x1b   :  { %578 = vmatprep.mubr.msk.f32.mxu0 %vm47_vm0, %v30_v14 }
  0x1e   :  { %579 = vmatmul.mubr.msk.f32.gmra.mxu0 %vm47_vm0, %v31_v15 }
  0x1f   :  { %581 = vmatprep.mubr.msk.f32.mxu0 %vm47_vm0, %v32_v16 }
  0x22   :  { %582 = vmatmul.mubr.msk.f32.gmra.mxu0 %vm47_vm0, %v33_v17 }
  0x23   :  { %584 = vmatprep.mubr.msk.f32.mxu0 %vm47_vm0, %v34_v18 }
  0x26   :  { %585 = vmatmul.mubr.msk.f32.gmra.mxu0 %vm47_vm0, %v35_v19 }
  0xca   :  { %v565_v25 = vpop.f32.mrf.mxu0 }
  0xcb   :  { %v168_v26 = vadd.f32 %v565_v25, %v481_v24 }
  0xcc   :  { %v162_v27 = vpop.f32.mrf.mxu0 }
  0xcd   :  { %v163_v28 = vadd.f32 %v481_v24, %v162_v27 }
  0xce   :  { %v568_v29 = vpop.f32.mrf.mxu0 }
  0xcf   :  { %619 = vtanh.f32 %v163_v28  ;;  %v178_v30 = vadd.f32 %v568_v29, %v481_v24 }
  0xd0   :  { %621 = vtanh.f32 %v168_v26  ;;  %v172_v31 = vpop.f32.mrf.mxu0 }
  0xd1   :  { %v173_v32 = vadd.f32 %v481_v24, %v172_v31 }
  0xd2   :  { %v571_v33 = vpop.f32.mrf.mxu0 }
  0xd3   :  { %623 = vtanh.f32 %v173_v32  ;;  %v188_v34 = vadd.f32 %v571_v33, %v481_v24 }
  0xd4   :  { %625 = vtanh.f32 %v178_v30  ;;  %v182_v35 = vpop.f32.mrf.mxu0 }
  0xd5   :  { %v183_v36 = vadd.f32 %v481_v24, %v182_v35 }
  0xd6   :  { %v574_v37 = vpop.f32.mrf.mxu0 }
  0xd7   :  { %627 = vtanh.f32 %v183_v36  ;;  %v198_v38 = vadd.f32 %v574_v37, %v481_v24 }
  0xd8   :  { %629 = vtanh.f32 %v188_v34  ;;  %v192_v39 = vpop.f32.mrf.mxu0 }
  0xd9   :  { %v193_v40 = vadd.f32 %v481_v24, %v192_v39 }
  0xda   :  { %v577_v41 = vpop.f32.mrf.mxu0 }
  0xdb   :  { %631 = vtanh.f32 %v193_v40  ;;  %v208_v43 = vadd.f32 %v577_v41, %v481_v24 }
  0xdc   :  { %v620_v42 = vpop.eup %619  ;;  %633 = vtanh.f32 %v198_v38  ;;  %v202_v44 = vpop.f32.mrf.mxu0 }
  0xdd   :  { %v622_v45 = vpop.eup %621  ;;  %v203_v46 = vadd.f32 %v481_v24, %v202_v44  ;;  %595 = vmatprep.mubr.msk.f32.mxu1 %vm47_vm0, %v620_v42 }
  0xde   :  { %v580_v47 = vpop.f32.mrf.mxu0  ;;  %596 = vmatmul.mubr.msk.f32.vlgmr.msra.gmra.mxu1 %vm47_vm0, %v622_v45 }
  0xdf   :  { %635 = vtanh.f32 %v203_v46  ;;  %v218_v49 = vadd.f32 %v580_v47, %v481_v24 }
  0xe0   :  { %v624_v48 = vpop.eup %623  ;;  %637 = vtanh.f32 %v208_v43  ;;  %v212_v50 = vpop.f32.mrf.mxu0 }
  0xe1   :  { %v626_v51 = vpop.eup %625  ;;  %v213_v52 = vadd.f32 %v481_v24, %v212_v50  ;;  %598 = vmatprep.mubr.msk.f32.mxu1 %vm47_vm0, %v624_v48 }
  0xe2   :  { %v583_v53 = vpop.f32.mrf.mxu0  ;;  %599 = vmatmul.mubr.msk.f32.gmra.mxu1 %vm47_vm0, %v626_v51 }
  0xe3   :  { %639 = vtanh.f32 %v213_v52  ;;  %v228_v55 = vadd.f32 %v583_v53, %v481_v24 }
  0xe4   :  { %v628_v54 = vpop.eup %627  ;;  %641 = vtanh.f32 %v218_v49  ;;  %v222_v56 = vpop.f32.mrf.mxu0 }
  0xe5   :  { %v630_v57 = vpop.eup %629  ;;  %v223_v58 = vadd.f32 %v481_v24, %v222_v56  ;;  %601 = vmatprep.mubr.msk.f32.mxu1 %vm47_vm0, %v628_v54 }
  0xe6   :  { %v586_v59 = vpop.f32.mrf.mxu0  ;;  %602 = vmatmul.mubr.msk.f32.gmra.mxu1 %vm47_vm0, %v630_v57 }
  0xe7   :  { %643 = vtanh.f32 %v223_v58  ;;  %v238_v61 = vadd.f32 %v586_v59, %v481_v24 }
  0xe8   :  { %v632_v60 = vpop.eup %631  ;;  %645 = vtanh.f32 %v228_v55  ;;  %v232_v62 = vpop.f32.mrf.mxu0 }
  0xe9   :  { %v634_v63 = vpop.eup %633  ;;  %v233_v0 = vadd.f32 %v481_v24, %v232_v62  ;;  %604 = vmatprep.mubr.msk.f32.mxu1 %vm47_vm0, %v632_v60 }
  0xea   :  { %605 = vmatmul.mubr.msk.f32.gmra.mxu1 %vm47_vm0, %v634_v63 }
  0xeb   :  { %647 = vtanh.f32 %v233_v0 }
  0xec   :  { %v636_v1 = vpop.eup %635  ;;  %649 = vtanh.f32 %v238_v61 }
  0xed   :  { %v638_v2 = vpop.eup %637  ;;  %607 = vmatprep.mubr.msk.f32.mxu1 %vm47_vm0, %v636_v1 }
  0xee   :  { %608 = vmatmul.mubr.msk.f32.gmra.mxu1 %vm47_vm0, %v638_v2 }
  0xf0   :  { %v640_v3 = vpop.eup %639 }
  0xf1   :  { %v642_v4 = vpop.eup %641  ;;  %610 = vmatprep.mubr.msk.f32.mxu1 %vm47_vm0, %v640_v3 }
  0xf2   :  { %611 = vmatmul.mubr.msk.f32.gmra.mxu1 %vm47_vm0, %v642_v4 }
  0xf4   :  { %v644_v5 = vpop.eup %643 }
  0xf5   :  { %v646_v6 = vpop.eup %645  ;;  %613 = vmatprep.mubr.msk.f32.mxu1 %vm47_vm0, %v644_v5 }
  0xf6   :  { %614 = vmatmul.mubr.msk.f32.gmra.mxu1 %vm47_vm0, %v646_v6 }
  0xf8   :  { %v648_v7 = vpop.eup %647 }
  0xf9   :  { %v650_v8 = vpop.eup %649  ;;  %616 = vmatprep.mubr.msk.f32.mxu1 %vm47_vm0, %v648_v7 }
  0xfa   :  { %617 = vmatmul.mubr.msk.f32.gmra.mxu1 %vm47_vm0, %v650_v8 }
 0x19e   :  { %v597_v10 = vpop.f32.mrf.mxu1 }
 0x19f   :  { %v388_v11 = vadd.f32 %v597_v10, %v498_v9 }
 0x1a0   :  { %v382_v12 = vpop.f32.mrf.mxu1 }
 0x1a1   :  { %462 = vst [vmem:[%s844_s5 + $0x8] sm:$0xff] %v388_v11  ;;  %v383_v13 = vadd.f32 %v498_v9, %v382_v12 }
 0x1a2   :  { %v600_v14 = vpop.f32.mrf.mxu1 }
 0x1a3   :  { %461 = vst [vmem:[%s844_s5] sm:$0xff] %v383_v13  ;;  %v398_v15 = vadd.f32 %v600_v14, %v498_v9 }
 0x1a4   :  { %v392_v16 = vpop.f32.mrf.mxu1 }
 0x1a5   :  { %464 = vst [vmem:[%s844_s5 + $0x18] sm:$0xff] %v398_v15  ;;  %v393_v17 = vadd.f32 %v498_v9, %v392_v16 }
 0x1a6   :  { %v603_v18 = vpop.f32.mrf.mxu1 }
 0x1a7   :  { %463 = vst [vmem:[%s844_s5 + $0x10] sm:$0xff] %v393_v17  ;;  %v408_v19 = vadd.f32 %v603_v18, %v498_v9 }
 0x1a8   :  { %v402_v20 = vpop.f32.mrf.mxu1 }
 0x1a9   :  { %466 = vst [vmem:[%s844_s5 + $0x28] sm:$0xff] %v408_v19  ;;  %v403_v21 = vadd.f32 %v498_v9, %v402_v20 }
 0x1aa   :  { %v606_v22 = vpop.f32.mrf.mxu1 }
 0x1ab   :  { %465 = vst [vmem:[%s844_s5 + $0x20] sm:$0xff] %v403_v21  ;;  %v418_v23 = vadd.f32 %v606_v22, %v498_v9 }
 0x1ac   :  { %v412_v24 = vpop.f32.mrf.mxu1 }
 0x1ad   :  { %468 = vst [vmem:[%s844_s5 + $0x38] sm:$0xff] %v418_v23  ;;  %v413_v25 = vadd.f32 %v498_v9, %v412_v24 }
 0x1ae   :  { %v609_v26 = vpop.f32.mrf.mxu1 }
 0x1af   :  { %467 = vst [vmem:[%s844_s5 + $0x30] sm:$0xff] %v413_v25  ;;  %v428_v27 = vadd.f32 %v609_v26, %v498_v9 }
 0x1b0   :  { %v422_v28 = vpop.f32.mrf.mxu1 }
 0x1b1   :  { %470 = vst [vmem:[%s844_s5 + $0x48] sm:$0xff] %v428_v27  ;;  %v423_v29 = vadd.f32 %v498_v9, %v422_v28 }
 0x1b2   :  { %v612_v30 = vpop.f32.mrf.mxu1 }
 0x1b3   :  { %469 = vst [vmem:[%s844_s5 + $0x40] sm:$0xff] %v423_v29  ;;  %v438_v31 = vadd.f32 %v612_v30, %v498_v9 }
 0x1b4   :  { %v432_v32 = vpop.f32.mrf.mxu1 }
 0x1b5   :  { %472 = vst [vmem:[%s844_s5 + $0x58] sm:$0xff] %v438_v31  ;;  %v433_v33 = vadd.f32 %v498_v9, %v432_v32 }
 0x1b6   :  { %v615_v34 = vpop.f32.mrf.mxu1 }
 0x1b7   :  { %471 = vst [vmem:[%s844_s5 + $0x50] sm:$0xff] %v433_v33  ;;  %v448_v35 = vadd.f32 %v615_v34, %v498_v9 }
 0x1b8   :  { %v442_v36 = vpop.f32.mrf.mxu1 }
 0x1b9   :  { %474 = vst [vmem:[%s844_s5 + $0x68] sm:$0xff] %v448_v35  ;;  %v443_v37 = vadd.f32 %v498_v9, %v442_v36 }
 0x1ba   :  { %v618_v38 = vpop.f32.mrf.mxu1 }
 0x1bb   :  { %473 = vst [vmem:[%s844_s5 + $0x60] sm:$0xff] %v443_v37  ;;  %v458_v39 = vadd.f32 %v618_v38, %v498_v9 }
 0x1bc   :  { %v452_v40 = vpop.f32.mrf.mxu1 }
 0x1bd   :  { %476 = vst [vmem:[%s844_s5 + $0x78] sm:$0xff] %v458_v39  ;;  %v453_v41 = vadd.f32 %v498_v9, %v452_v40 }
 0x1bf   :  { %475 = vst [vmem:[%s844_s5 + $0x70] sm:$0xff] %v453_v41 }

</bundles_post_ra>
